<compile_context>
chip_gen: v5e
topology: v5e:2x2
jax: 0.10.0
libtpu: 0.0.40
codegen_flags: <defaults>
</compile_context>

<pallas_src>
import jax
import jax.numpy as jnp
from jax.experimental import pallas as pl
from jax.experimental.pallas import tpu as pltpu


def _parallel_kernel(x_ref, xh_ref, w3_ref, b3_ref, w5_ref, b5_ref, o_ref, xw_ref):
    # x_ref : (C_in, TL)      current length-tile of the (pad=2) padded input
    # xh_ref: (C_in, 4)       right halo (next 4 padded columns)
    # w3_ref: (3, C_out, C_in)   w5_ref: (5, C_out, C_in)
    # b3_ref, b5_ref: (C_out, 1)
    # o_ref : (2*C_out, TL)   [conv3 ; conv5] channel-concatenated output tile
    # xw_ref: (C_in, TL + 4)  VMEM scratch holding the haloed window
    tl = x_ref.shape[-1]
    c_out = o_ref.shape[0] // 2

    # Stitch [tile | right-halo] into one window. Stores are lane-aligned.
    xw_ref[:, :tl] = x_ref[...]
    xw_ref[:, tl:] = xh_ref[...]
    xw = xw_ref[...]

    # Conv1d(k=3, pad=1): taps sit at offsets 1..3 of the pad-2 window.
    acc3 = jnp.zeros((c_out, tl), jnp.float32)
    for k in range(3):
        acc3 = acc3 + jnp.dot(w3_ref[k], xw[:, 1 + k:1 + k + tl],
                              preferred_element_type=jnp.float32)

    # Conv1d(k=5, pad=2): taps sit at offsets 0..4 of the pad-2 window.
    acc5 = jnp.zeros((c_out, tl), jnp.float32)
    for k in range(5):
        acc5 = acc5 + jnp.dot(w5_ref[k], xw[:, k:k + tl],
                              preferred_element_type=jnp.float32)

    acc3 = jnp.maximum(acc3 + b3_ref[...], 0.0)
    acc5 = jnp.maximum(acc5 + b5_ref[...], 0.0)

    # torch.cat([conv3, conv5], dim=1) == disjoint channel slices of the output.
    o_ref[:c_out, :] = acc3.astype(o_ref.dtype)
    o_ref[c_out:, :] = acc5.astype(o_ref.dtype)


def parallel_forward(x, w3, b3, w5, b5, *, tile_l=512):
    """Pallas equivalent of Parallel.forward.

    x  : [B, C_in, L]
    w3 : [3, C_out, C_in]   (torch Conv1d weight [C_out, C_in, 3] transposed)
    b3 : [C_out, 1]
    w5 : [5, C_out, C_in]
    b5 : [C_out, 1]
    returns [B, 2*C_out, L]

    tile_l: length-tile, multiple of 128. ~512 is a good default (≈85% of HBM
    roofline per measured tiled-copy data) and keeps the double-buffered VMEM
    footprint small enough for v7x's 64 MiB / v5e's 16 MiB scoped limits.
    """
    B, c_in, L = x.shape
    k3, c_out, _ = w3.shape
    k5 = w5.shape[0]
    assert (k3, k5) == (3, 5)

    tl = min(tile_l, max(128, pl.cdiv(L, 128) * 128))
    lp = pl.cdiv(L, tl) * tl          # L rounded up to a multiple of the tile
    n_l = lp // tl
    pad_r = lp - L

    # Pad with the max conv padding (2) plus the tile-rounding zeros. Extra
    # right-zeros are harmless: positions >= L are sliced off at the end and
    # positions < L see exactly the zeros the conv padding would provide.
    xp = jnp.pad(x, ((0, 0), (0, 0), (2, 2 + pad_r)))           # [B, C_in, lp+4]

    # Tiny per-tile right-halo array: x_halo[b, j] = xp[b, :, (j+1)*tl:(j+1)*tl+4]
    idx = (jnp.arange(n_l)[:, None] + 1) * tl + jnp.arange(4)[None, :]   # [n_l, 4]
    x_halo = jnp.transpose(xp[:, :, idx], (0, 2, 1, 3))         # [B, n_l, C_in, 4]

    itemsize = x.dtype.itemsize
    cost = pl.CostEstimate(
        flops=2 * (k3 + k5) * B * c_out * c_in * lp,
        transcendentals=0,
        bytes_accessed=(xp.size + x_halo.size + B * 2 * c_out * lp
                        + w3.size + b3.size + w5.size + b5.size) * itemsize,
    )

    out = pl.pallas_call(
        _parallel_kernel,
        out_shape=jax.ShapeDtypeStruct((B, 2 * c_out, lp), x.dtype),
        grid_spec=pltpu.PrefetchScalarGridSpec(
            num_scalar_prefetch=0,
            grid=(B, n_l),
            in_specs=[
                # padded input, one lane-dense length tile per grid step
                pl.BlockSpec((pl.Squeezed(), c_in, tl), lambda b, j: (b, 0, j)),
                # matching right-halo columns
                pl.BlockSpec((pl.Squeezed(), pl.Squeezed(), c_in, 4),
                             lambda b, j: (b, j, 0, 0)),
                # weights / biases: tiny, resident full-extent
                pl.BlockSpec((k3, c_out, c_in), lambda b, j: (0, 0, 0)),
                pl.BlockSpec((c_out, 1), lambda b, j: (0, 0)),
                pl.BlockSpec((k5, c_out, c_in), lambda b, j: (0, 0, 0)),
                pl.BlockSpec((c_out, 1), lambda b, j: (0, 0)),
            ],
            out_specs=pl.BlockSpec((pl.Squeezed(), 2 * c_out, tl),
                                   lambda b, j: (b, 0, j)),
            scratch_shapes=[pltpu.VMEM((c_in, tl + 4), x.dtype)],
        ),
        compiler_params=pltpu.CompilerParams(
            dimension_semantics=("parallel", "parallel")),
        cost_estimate=cost,
    )(xp, x_halo, w3, b3, w5, b5)

    return out[:, :, :L]


# ---------------------------------------------------------------------------
# Pure-JAX reference (same semantics as the PyTorch module).
# ---------------------------------------------------------------------------
def _conv1d_relu_ref(x, w, b, pad):
    B, c_in, L = x.shape
    K, c_out, _ = w.shape
    xp = jnp.pad(x, ((0, 0), (0, 0), (pad, pad)))
    acc = jnp.zeros((B, c_out, L), jnp.float32)
    for k in range(K):
        acc = acc + jnp.einsum("oi,bil->bol", w[k], xp[:, :, k:k + L])
    return jnp.maximum(acc + b[None, :, :], 0.0)


def parallel_ref(x, w3, b3, w5, b5):
    return jnp.concatenate([_conv1d_relu_ref(x, w3, b3, 1),
                            _conv1d_relu_ref(x, w5, b5, 2)], axis=1).astype(x.dtype)


if __name__ == "__main__":
    key = jax.random.PRNGKey(0)
    B, C_IN, C_OUT, L = 2, 4, 8, 256     # Parallel(size1=4, size2=8), seq len 256
    k1, k2, k3_, k4, k5_, k6 = jax.random.split(key, 6)

    def _bf16_grid(a):
        # Snap values to the bf16 grid (kept in f32) so MXU vs XLA reference
        # rounding is identical and the check can be tight.
        return a.astype(jnp.bfloat16).astype(jnp.float32)

    x = _bf16_grid(jax.random.normal(k1, (B, C_IN, L), dtype=jnp.float32))
    s3 = 1.0 / (C_IN * 3) ** 0.5
    s5 = 1.0 / (C_IN * 5) ** 0.5
    # Weights stored as [K, C_out, C_in] (transpose of torch's [C_out, C_in, K]).
    w3 = _bf16_grid(jax.random.uniform(k2, (3, C_OUT, C_IN), jnp.float32, -s3, s3))
    b3 = jax.random.uniform(k3_, (C_OUT, 1), jnp.float32, -s3, s3)
    w5 = _bf16_grid(jax.random.uniform(k4, (5, C_OUT, C_IN), jnp.float32, -s5, s5))
    b5 = jax.random.uniform(k5_, (C_OUT, 1), jnp.float32, -s5, s5)

    # tile_l=128 -> 2 length tiles per batch: exercises the cross-tile halo path.
    out = parallel_forward(x, w3, b3, w5, b5, tile_l=128)
    out = jax.block_until_ready(out)

    ref = parallel_ref(x, w3, b3, w5, b5)
    assert out.shape == (B, 2 * C_OUT, L), out.shape
    assert out.dtype == x.dtype
    assert bool(jnp.allclose(out, ref, atol=1e-5, rtol=1e-5)), \
        float(jnp.max(jnp.abs(out - ref)))

    # Second check: length not a multiple of the tile (exercises the pad path).
    x2 = _bf16_grid(jax.random.normal(k6, (B, C_IN, 200), dtype=jnp.float32))
    out2 = jax.block_until_ready(parallel_forward(x2, w3, b3, w5, b5, tile_l=128))
    ref2 = parallel_ref(x2, w3, b3, w5, b5)
    assert out2.shape == (B, 2 * C_OUT, 200), out2.shape
    assert bool(jnp.allclose(out2, ref2, atol=1e-5, rtol=1e-5)), \
        float(jnp.max(jnp.abs(out2 - ref2)))

    print("KERNEL_OK")
</pallas_src>

<mosaic_0001>
module attributes {stable_mosaic.version = 11 : i64} {
  func.func @_parallel_kernel(%arg0: i32, %arg1: i32, %arg2: memref<1x4x128xf32, #tpu.memory_space<vmem>>, %arg3: memref<1x1x4x4xf32, #tpu.memory_space<vmem>>, %arg4: memref<3x8x4xf32, #tpu.memory_space<vmem>>, %arg5: memref<8x1xf32, #tpu.memory_space<vmem>>, %arg6: memref<5x8x4xf32, #tpu.memory_space<vmem>>, %arg7: memref<8x1xf32, #tpu.memory_space<vmem>>, %arg8: memref<1x16x128xf32, #tpu.memory_space<vmem>>, %arg9: memref<4x132xf32, #tpu.memory_space<vmem>>) attributes {dimension_semantics = [#tpu.dimension_semantics<parallel>, #tpu.dimension_semantics<parallel>], iteration_bounds = array<i64: 2, 2>, scalar_prefetch = 0 : i64, scratch_operands = 1 : i64, tpu.core_type = #tpu.core_type<tc>, window_params = [{transform_indices = @transform_0, window_bounds = array<i64: 1, 4, 128>}, {transform_indices = @transform_1, window_bounds = array<i64: 1, 1, 4, 4>}, {pipeline_mode = #tpu.pipeline_mode<synchronous>, transform_indices = @transform_2, window_bounds = array<i64: 3, 8, 4>}, {pipeline_mode = #tpu.pipeline_mode<synchronous>, transform_indices = @transform_3, window_bounds = array<i64: 8, 1>}, {pipeline_mode = #tpu.pipeline_mode<synchronous>, transform_indices = @transform_4, window_bounds = array<i64: 5, 8, 4>}, {pipeline_mode = #tpu.pipeline_mode<synchronous>, transform_indices = @transform_5, window_bounds = array<i64: 8, 1>}, {transform_indices = @transform_6, window_bounds = array<i64: 1, 16, 128>}]} {
    %c0 = arith.constant 0 : index
    %c0_0 = arith.constant 0 : index
    %c0_1 = arith.constant 0 : index
    %0 = vector.load %arg2[%c0, %c0_0, %c0_1] : memref<1x4x128xf32, #tpu.memory_space<vmem>>, vector<1x4x128xf32>
    %1 = vector.shape_cast %0 : vector<1x4x128xf32> to vector<4x128xf32>
    %c0_2 = arith.constant 0 : index
    %c0_3 = arith.constant 0 : index
    %2 = vector.load %arg9[%c0_2, %c0_3] : memref<4x132xf32, #tpu.memory_space<vmem>>, vector<4x128xf32>
    tpu.vector_store %arg9[%c0_2, %c0_3], %1 {strides = array<i32>} : memref<4x132xf32, #tpu.memory_space<vmem>>, vector<4x128xf32>,
    %c0_4 = arith.constant 0 : index
    %c0_5 = arith.constant 0 : index
    %c0_6 = arith.constant 0 : index
    %c0_7 = arith.constant 0 : index
    %3 = vector.load %arg3[%c0_4, %c0_5, %c0_6, %c0_7] : memref<1x1x4x4xf32, #tpu.memory_space<vmem>>, vector<1x1x4x4xf32>
    %4 = vector.shape_cast %3 : vector<1x1x4x4xf32> to vector<4x4xf32>
    %c0_8 = arith.constant 0 : index
    %c128 = arith.constant 128 : index
    %5 = vector.load %arg9[%c0_8, %c128] : memref<4x132xf32, #tpu.memory_space<vmem>>, vector<4x4xf32>
    tpu.vector_store %arg9[%c0_8, %c128], %4 {strides = array<i32>} : memref<4x132xf32, #tpu.memory_space<vmem>>, vector<4x4xf32>,
    %c0_9 = arith.constant 0 : index
    %c0_10 = arith.constant 0 : index
    %6 = vector.load %arg9[%c0_9, %c0_10] : memref<4x132xf32, #tpu.memory_space<vmem>>, vector<4x132xf32>
    %cst = arith.constant 0.000000e+00 : f32
    %7 = vector.broadcast %cst : f32 to vector<8x128xf32>
    %c0_11 = arith.constant 0 : index
    %c0_12 = arith.constant 0 : index
    %c0_13 = arith.constant 0 : index
    %8 = vector.load %arg4[%c0_11, %c0_12, %c0_13] : memref<3x8x4xf32, #tpu.memory_space<vmem>>, vector<1x8x4xf32>
    %9 = vector.shape_cast %8 : vector<1x8x4xf32> to vector<8x4xf32>
    %10 = vector.extract_strided_slice %6 {offsets = [0, 1], sizes = [4, 128], strides = [1, 1]} : vector<4x132xf32> to vector<4x128xf32>
    %cst_14 = arith.constant dense<0.000000e+00> : vector<8x128xf32>
    %11 = tpu.matmul %9, %10, %cst_14 {dimension_numbers = #tpu.dot_dimension_numbers<[1], [0], [0], [1], [0, 0, 1, 1], [], []>} : vector<8x4xf32>, vector<4x128xf32>, vector<8x128xf32> -> vector<8x128xf32>
    %12 = arith.addf %7, %11 : vector<8x128xf32>
    %c1 = arith.constant 1 : index
    %c0_15 = arith.constant 0 : index
    %c0_16 = arith.constant 0 : index
    %13 = vector.load %arg4[%c1, %c0_15, %c0_16] : memref<3x8x4xf32, #tpu.memory_space<vmem>>, vector<1x8x4xf32>
    %14 = vector.shape_cast %13 : vector<1x8x4xf32> to vector<8x4xf32>
    %15 = vector.extract_strided_slice %6 {offsets = [0, 2], sizes = [4, 128], strides = [1, 1]} : vector<4x132xf32> to vector<4x128xf32>
    %cst_17 = arith.constant dense<0.000000e+00> : vector<8x128xf32>
    %16 = tpu.matmul %14, %15, %cst_17 {dimension_numbers = #tpu.dot_dimension_numbers<[1], [0], [0], [1], [0, 0, 1, 1], [], []>} : vector<8x4xf32>, vector<4x128xf32>, vector<8x128xf32> -> vector<8x128xf32>
    %17 = arith.addf %12, %16 : vector<8x128xf32>
    %c2 = arith.constant 2 : index
    %c0_18 = arith.constant 0 : index
    %c0_19 = arith.constant 0 : index
    %18 = vector.load %arg4[%c2, %c0_18, %c0_19] : memref<3x8x4xf32, #tpu.memory_space<vmem>>, vector<1x8x4xf32>
    %19 = vector.shape_cast %18 : vector<1x8x4xf32> to vector<8x4xf32>
    %20 = vector.extract_strided_slice %6 {offsets = [0, 3], sizes = [4, 128], strides = [1, 1]} : vector<4x132xf32> to vector<4x128xf32>
    %cst_20 = arith.constant dense<0.000000e+00> : vector<8x128xf32>
    %21 = tpu.matmul %19, %20, %cst_20 {dimension_numbers = #tpu.dot_dimension_numbers<[1], [0], [0], [1], [0, 0, 1, 1], [], []>} : vector<8x4xf32>, vector<4x128xf32>, vector<8x128xf32> -> vector<8x128xf32>
    %22 = arith.addf %17, %21 : vector<8x128xf32>
    %cst_21 = arith.constant 0.000000e+00 : f32
    %23 = vector.broadcast %cst_21 : f32 to vector<8x128xf32>
    %c0_22 = arith.constant 0 : index
    %c0_23 = arith.constant 0 : index
    %c0_24 = arith.constant 0 : index
    %24 = vector.load %arg6[%c0_22, %c0_23, %c0_24] : memref<5x8x4xf32, #tpu.memory_space<vmem>>, vector<1x8x4xf32>
    %25 = vector.shape_cast %24 : vector<1x8x4xf32> to vector<8x4xf32>
    %26 = vector.extract_strided_slice %6 {offsets = [0, 0], sizes = [4, 128], strides = [1, 1]} : vector<4x132xf32> to vector<4x128xf32>
    %cst_25 = arith.constant dense<0.000000e+00> : vector<8x128xf32>
    %27 = tpu.matmul %25, %26, %cst_25 {dimension_numbers = #tpu.dot_dimension_numbers<[1], [0], [0], [1], [0, 0, 1, 1], [], []>} : vector<8x4xf32>, vector<4x128xf32>, vector<8x128xf32> -> vector<8x128xf32>
    %28 = arith.addf %23, %27 : vector<8x128xf32>
    %c1_26 = arith.constant 1 : index
    %c0_27 = arith.constant 0 : index
    %c0_28 = arith.constant 0 : index
    %29 = vector.load %arg6[%c1_26, %c0_27, %c0_28] : memref<5x8x4xf32, #tpu.memory_space<vmem>>, vector<1x8x4xf32>
    %30 = vector.shape_cast %29 : vector<1x8x4xf32> to vector<8x4xf32>
    %31 = vector.extract_strided_slice %6 {offsets = [0, 1], sizes = [4, 128], strides = [1, 1]} : vector<4x132xf32> to vector<4x128xf32>
    %cst_29 = arith.constant dense<0.000000e+00> : vector<8x128xf32>
    %32 = tpu.matmul %30, %31, %cst_29 {dimension_numbers = #tpu.dot_dimension_numbers<[1], [0], [0], [1], [0, 0, 1, 1], [], []>} : vector<8x4xf32>, vector<4x128xf32>, vector<8x128xf32> -> vector<8x128xf32>
    %33 = arith.addf %28, %32 : vector<8x128xf32>
    %c2_30 = arith.constant 2 : index
    %c0_31 = arith.constant 0 : index
    %c0_32 = arith.constant 0 : index
    %34 = vector.load %arg6[%c2_30, %c0_31, %c0_32] : memref<5x8x4xf32, #tpu.memory_space<vmem>>, vector<1x8x4xf32>
    %35 = vector.shape_cast %34 : vector<1x8x4xf32> to vector<8x4xf32>
    %36 = vector.extract_strided_slice %6 {offsets = [0, 2], sizes = [4, 128], strides = [1, 1]} : vector<4x132xf32> to vector<4x128xf32>
    %cst_33 = arith.constant dense<0.000000e+00> : vector<8x128xf32>
    %37 = tpu.matmul %35, %36, %cst_33 {dimension_numbers = #tpu.dot_dimension_numbers<[1], [0], [0], [1], [0, 0, 1, 1], [], []>} : vector<8x4xf32>, vector<4x128xf32>, vector<8x128xf32> -> vector<8x128xf32>
    %38 = arith.addf %33, %37 : vector<8x128xf32>
    %c3 = arith.constant 3 : index
    %c0_34 = arith.constant 0 : index
    %c0_35 = arith.constant 0 : index
    %39 = vector.load %arg6[%c3, %c0_34, %c0_35] : memref<5x8x4xf32, #tpu.memory_space<vmem>>, vector<1x8x4xf32>
    %40 = vector.shape_cast %39 : vector<1x8x4xf32> to vector<8x4xf32>
    %41 = vector.extract_strided_slice %6 {offsets = [0, 3], sizes = [4, 128], strides = [1, 1]} : vector<4x132xf32> to vector<4x128xf32>
    %cst_36 = arith.constant dense<0.000000e+00> : vector<8x128xf32>
    %42 = tpu.matmul %40, %41, %cst_36 {dimension_numbers = #tpu.dot_dimension_numbers<[1], [0], [0], [1], [0, 0, 1, 1], [], []>} : vector<8x4xf32>, vector<4x128xf32>, vector<8x128xf32> -> vector<8x128xf32>
    %43 = arith.addf %38, %42 : vector<8x128xf32>
    %c4 = arith.constant 4 : index
    %c0_37 = arith.constant 0 : index
    %c0_38 = arith.constant 0 : index
    %44 = vector.load %arg6[%c4, %c0_37, %c0_38] : memref<5x8x4xf32, #tpu.memory_space<vmem>>, vector<1x8x4xf32>
    %45 = vector.shape_cast %44 : vector<1x8x4xf32> to vector<8x4xf32>
    %46 = vector.extract_strided_slice %6 {offsets = [0, 4], sizes = [4, 128], strides = [1, 1]} : vector<4x132xf32> to vector<4x128xf32>
    %cst_39 = arith.constant dense<0.000000e+00> : vector<8x128xf32>
    %47 = tpu.matmul %45, %46, %cst_39 {dimension_numbers = #tpu.dot_dimension_numbers<[1], [0], [0], [1], [0, 0, 1, 1], [], []>} : vector<8x4xf32>, vector<4x128xf32>, vector<8x128xf32> -> vector<8x128xf32>
    %48 = arith.addf %43, %47 : vector<8x128xf32>
    %c0_40 = arith.constant 0 : index
    %c0_41 = arith.constant 0 : index
    %49 = vector.load %arg5[%c0_40, %c0_41] : memref<8x1xf32, #tpu.memory_space<vmem>>, vector<8x1xf32>
    %50 = vector.broadcast %49 : vector<8x1xf32> to vector<8x128xf32>
    %51 = arith.addf %22, %50 : vector<8x128xf32>
    %cst_42 = arith.constant 0.000000e+00 : f32
    %52 = vector.broadcast %cst_42 : f32 to vector<8x128xf32>
    %53 = arith.maximumf %51, %52 : vector<8x128xf32>
    %c0_43 = arith.constant 0 : index
    %c0_44 = arith.constant 0 : index
    %54 = vector.load %arg7[%c0_43, %c0_44] : memref<8x1xf32, #tpu.memory_space<vmem>>, vector<8x1xf32>
    %55 = vector.broadcast %54 : vector<8x1xf32> to vector<8x128xf32>
    %56 = arith.addf %48, %55 : vector<8x128xf32>
    %cst_45 = arith.constant 0.000000e+00 : f32
    %57 = vector.broadcast %cst_45 : f32 to vector<8x128xf32>
    %58 = arith.maximumf %56, %57 : vector<8x128xf32>
    %c0_46 = arith.constant 0 : index
    %c0_47 = arith.constant 0 : index
    %c0_48 = arith.constant 0 : index
    %59 = vector.load %arg8[%c0_46, %c0_47, %c0_48] : memref<1x16x128xf32, #tpu.memory_space<vmem>>, vector<1x8x128xf32>
    %60 = vector.shape_cast %59 : vector<1x8x128xf32> to vector<8x128xf32>
    %61 = vector.shape_cast %53 : vector<8x128xf32> to vector<1x8x128xf32>
    tpu.vector_store %arg8[%c0_46, %c0_47, %c0_48], %61 {strides = array<i32>} : memref<1x16x128xf32, #tpu.memory_space<vmem>>, vector<1x8x128xf32>,
    %c0_49 = arith.constant 0 : index
    %c8 = arith.constant 8 : index
    %c0_50 = arith.constant 0 : index
    %62 = vector.load %arg8[%c0_49, %c8, %c0_50] : memref<1x16x128xf32, #tpu.memory_space<vmem>>, vector<1x8x128xf32>
    %63 = vector.shape_cast %62 : vector<1x8x128xf32> to vector<8x128xf32>
    %64 = vector.shape_cast %58 : vector<8x128xf32> to vector<1x8x128xf32>
    tpu.vector_store %arg8[%c0_49, %c8, %c0_50], %64 {strides = array<i32>} : memref<1x16x128xf32, #tpu.memory_space<vmem>>, vector<1x8x128xf32>,
    return
  }
  func.func @transform_0(%arg0: i32, %arg1: i32) -> (i32, i32, i32) {
    %c0_i32 = arith.constant 0 : i32
    %c0_i32_0 = arith.constant 0 : i32
    return %arg0, %c0_i32, %arg1 : i32, i32, i32
  }
  func.func @transform_1(%arg0: i32, %arg1: i32) -> (i32, i32, i32, i32) {
    %c0_i32 = arith.constant 0 : i32
    %c0_i32_0 = arith.constant 0 : i32
    %c0_i32_1 = arith.constant 0 : i32
    return %arg0, %arg1, %c0_i32, %c0_i32_0 : i32, i32, i32, i32
  }
  func.func @transform_2(%arg0: i32, %arg1: i32) -> (i32, i32, i32) {
    %c0_i32 = arith.constant 0 : i32
    %c0_i32_0 = arith.constant 0 : i32
    %c0_i32_1 = arith.constant 0 : i32
    %c0_i32_2 = arith.constant 0 : i32
    return %c0_i32, %c0_i32_0, %c0_i32_1 : i32, i32, i32
  }
  func.func @transform_3(%arg0: i32, %arg1: i32) -> (i32, i32) {
    %c0_i32 = arith.constant 0 : i32
    %c0_i32_0 = arith.constant 0 : i32
    %c0_i32_1 = arith.constant 0 : i32
    return %c0_i32, %c0_i32_0 : i32, i32
  }
  func.func @transform_4(%arg0: i32, %arg1: i32) -> (i32, i32, i32) {
    %c0_i32 = arith.constant 0 : i32
    %c0_i32_0 = arith.constant 0 : i32
    %c0_i32_1 = arith.constant 0 : i32
    %c0_i32_2 = arith.constant 0 : i32
    return %c0_i32, %c0_i32_0, %c0_i32_1 : i32, i32, i32
  }
  func.func @transform_5(%arg0: i32, %arg1: i32) -> (i32, i32) {
    %c0_i32 = arith.constant 0 : i32
    %c0_i32_0 = arith.constant 0 : i32
    %c0_i32_1 = arith.constant 0 : i32
    return %c0_i32, %c0_i32_0 : i32, i32
  }
  func.func @transform_6(%arg0: i32, %arg1: i32) -> (i32, i32, i32) {
    %c0_i32 = arith.constant 0 : i32
    %c0_i32_0 = arith.constant 0 : i32
    return %arg0, %c0_i32, %arg1 : i32, i32, i32
  }
}

</mosaic_0001>

<bundles_post_ra>
// kernel: tpu_custom_call.1
= control target key start
LH: loop header
LB: loop body
LE: loop exit
PB: predicated region body
PF: predicated region fallthrough
CT: control target
= control target key end

     0   :  { %11 = vsyncpa [#allocation4], 0  ;;  %s1169_s0 = inlined_call_operand.vmem [shape: f32[2,4,260], index: 0, kind: input, shape index: {}]   ;;  %s1170_s1 = inlined_call_operand.vmem [shape: f32[2,2,4,4], index: 1, kind: input, shape index: {}]   ;;  %s1171_s2 = inlined_call_operand.vmem [shape: f32[3,8,4], index: 2, kind: input, shape index: {}]   ;;  %s1172_s3 = inlined_call_operand.vmem [shape: f32[8,1], index: 3, kind: input, shape index: {}]   ;;  %s1173_s4 = inlined_call_operand.vmem [shape: f32[5,8,4], index: 4, kind: input, shape index: {}]   ;;  %s1174_s5 = inlined_call_operand.vmem [shape: f32[8,1], index: 5, kind: input, shape index: {}]   ;;  %s1175_s6 = inlined_call_operand.hbm [shape: f32[2,16,256], index: 6, kind: output, shape index: {}]  }
   0x1   :  { %13 = vsyncpa [#allocation4 + $0x1], 0  ;;  %s984_s21 = smov 0   ;;  %s986_s22 = smov 0  }
   0x2   :  { %s988_s23 = smov 0   ;;  %s990_s24 = smov 0  }
   0x3   :  { %s992_s25 = smov 0   ;;  %s994_s26 = smov 0  }
   0x4   :  { %s996_s27 = smov 0   ;;  %s998_s28 = smov 0  }
   0x5 LB: > { %1180 = sst [smem:[#allocation6_spill]] %s931_s26  ;;  %s727_s29 = sadd.s32 4294967295, %s939_s28   ;;  %s939_s28 = sphi %s998_s28, %s19_s28   ;;  %s935_s27 = sphi %s996_s27, %s1189_s27   ;;  %s931_s26 = sphi %s994_s26, %s1188_s26   ;;  %s927_s25 = sphi %s992_s25, %s1187_s25   ;;  %s923_s24 = sphi %s990_s24, %s1186_s24   ;;  %s919_s23 = sphi %s988_s23, %s1192_s23   ;;  %s915_s22 = sphi %s986_s22, %s1191_s22   ;;  %s911_s21 = sphi %s984_s21, %s1190_s21  }
   0x6   : > { %1181 = sst [smem:[#allocation7_spill]] %s935_s27  ;;  %s728_s30 = sadd.s32 4294967294, %s939_s28  }
   0x7   : > { %s28_s7 = sadd.s32 1, %s931_s26  ;;  %s31_s8 = sadd.s32 1, %s935_s27 }
   0x8   : > { %p29_p0 = scmp.ge.s32.totalorder %s28_s7, 2  ;;  %p190_p1 = scmp.ne.s32.totalorder %s919_s23, %s915_s22 }
   0x9   : > { %p191_p2 = scmp.eq.s32.totalorder %s727_s29, 3  ;;  %p196_p5 = scmp.ne.s32.totalorder %s915_s22, %s911_s21 }
   0xa   : > { %s1194_s7 = smov (%p29_p0, %s28_s7), 0  ;;  %s1196_s8 = smov (!%p29_p0, %s31_s8), %s935_s27 }
   0xb   : > { %1182 = sst [smem:[#allocation8_spill]] %s1194_s7  ;;  %s176_s9 = ssub.s32 %s931_s26, %s1194_s7 }
   0xc   : > { %p1035_p3 = por %p191_p2, %p190_p1  ;;  %p33_p4 = scmp.ge.s32.totalorder %s1196_s8, 2 }
   0xd   : > { %p197_p6 = scmp.eq.s32.totalorder %s728_s30, 3  ;;  %p731_p7 = scmp.ge.s32.totalorder %s939_s28, 1 }
   0xe   : > { %s1198_s8 = smov (%p33_p4, %s1196_s8), 0  ;;  %p249_p9 = scmp.lt.s32.totalorder %s939_s28, 5 }
   0xf   : > { %1184 = sst [smem:[#allocation9_spill]] %s1198_s8  ;;  %p1044_p8 = por %p197_p6, %p196_p5 }
  0x10   : > { %s175_s12 = ssub.s32 %s935_s27, %s1198_s8  ;;  %s180_s13 = sadd.s32 1, %s919_s23 }
  0x11   : > { %s177_s14 = sor.u32 %s176_s9, %s175_s12  ;;  %p250_p10 = pnand %p731_p7, %p249_p9 }
  0x12   : > { %p178_p11 = scmp.eq.s32.totalorder %s177_s14, 0  ;;  %p290_p12 = scmp.lt.s32.totalorder (!%p250_p10), %s927_s25, 1 }
  0x13   : > { %253 = sbr.rel (%p250_p10) target bundleno = 363 (0x16b), region = 44  ;;  %p292_p13 = scmp.lt.s32.totalorder (!%p250_p10), %s923_s24, 2 }
  0x14   : > { %s1053_s15 = scalar_select %p178_p11, %s919_s23, %s180_s13  }
  0x15   : > { %p300_p0 = scmp.lt.s32.totalorder (!%p250_p10), %s923_s24, 1  ;;  %s944_s27 = smov (!%p250_p10), 124  }
  0x16   : > { %s759_s12 = sshll.u32 (!%p250_p10), %s927_s25, 2 }
  0x17   : > { %s622_s13 = sadd.s32 (!%p250_p10), %s923_s24, %s759_s12 }
  0x18   : > { %s291_s16 = scalar_select %p290_p12, %s927_s25, 1  ;;  %vm309_vm0 = vcmask 27648   ;;  %vm323_vm1 = vcmask 1031168   ;;  %vm329_vm2 = vcmask 1043456   ;;  %vm359_vm3 = vcmask 1039360   ;;  %v736_v24 = vld [vmem:[%s1171_s2 + $0x8] sm:$0xff] }
  0x19   : > { %s293_s17 = scalar_select %p292_p13, %s923_s24, 2  ;;  %vm325_vm4 = vcmask 31744   ;;  %v744_v27 = vld [vmem:[%s1173_s4 + $0x8] sm:$0xff]  ;;  %v312_v28 = vld [vmem:[%s1171_s2] sm:$0xff]  ;;  %vm395_vm5 = vcmask 1022976   ;;  %v741_v32 = vld [vmem:[%s1171_s2 + $0x10] sm:$0xff] }
  0x1a   : > { %s763_s18 = smul.u32 3, %s291_s16  ;;  %s734_s19 = sshll.u32 %s291_s16, 1  ;;  %v423_v30 = vld [vmem:[%s1173_s4] sm:$0xff]  ;;  %v945_v36 = vmov 0   ;;  %v752_v39 = vld [vmem:[%s1173_s4 + $0x18] sm:$0xff]  ;;  %vm565_vm6 = vcmask 1014784  }
  0x1b   : > { %s301_s20 = scalar_select %p300_p0, %s923_s24, 1  ;;  %v601_v34 = vld [vmem:[%s1174_s5] sm:$0xff]  ;;  %844 = vset.pattern.permute.xlu0 %v945_v36  ;;  %843 = vset.pattern.permute.xlu2 %v945_v36  ;;  %v749_v47 = vld [vmem:[%s1173_s4 + $0x10] sm:$0xff] }
  0x1c   : > { %s295_s29 = sadd.s32 %s763_s18, %s293_s17  ;;  %s941_s16 = smov 126   ;;  %v593_v35 = vld [vmem:[%s1172_s3] sm:$0xff] }
  0x1d   : > { %s733_s30 = sshll.u32 %s295_s29, 2  ;;  %s303_s9 = sadd.s32 %s734_s19, %s301_s20  ;;  %v755_v43 = vld [vmem:[%s1173_s4 + $0x20] sm:$0xff] }
  0x1e   : > { %s297_s14 = scalar_lea.vmem %s1169_s0, %s733_s30  ;;  %s735_s8 = sshll.u32 %s303_s9, 2 }
  0x1f   : > { %s305_s26 = scalar_lea.vmem %s1170_s1, %s735_s8  ;;  %v306_v0 = vld [vmem:[%s297_s14] sm:$0xf]  ;;  %s942_s17 = smov 127  }
  0x20   : > { %307 = vst [vmem:[#allocation2] sm:$0xf] %v306_v0  ;;  %v308_v1 = vld [vmem:[%s305_s26] sm:$0xf]  ;;  %s943_s26 = smov 125   ;;  %s287_s29 = sand.u32 1, %s915_s22  }
  0x21   : > { %310 = vst.msk [vmem:[#allocation2 + $0x4] sm:$0xf] %vm309_vm0, %v308_v1  ;;  %s732_s30 = sshll.u32 %s287_s29, 4  ;;  %s760_s14 = sshll.u32 %s622_s13, 3 }
  0x22   : > { %s289_s9 = scalar_lea.vmem [#allocation3], %s732_s30  ;;  %s612_s24 = scalar_lea.sflag [#allocation4], %s287_s29 }
  0x23   : > { %s865_s20 = scalar_lea.hbm %s1175_s6, 64 }
  0x28   : > { %v311_v2 = vld [vmem:[#allocation2] sm:$0xff] }
  0x29   : > { %316 = vst [vmem:[#allocation1] ss:$2 sm:$0xff] %v311_v2 }
  0x30   : > { %v317_v3 = vld.sshfl [vmem:[#allocation1] sm:$0xff pattern:$0x75316420]  ;;  %v318_v4 = vld.sshfl [vmem:[#allocation1 + $0x8] sm:$0xff pattern:$0x75316420] }
  0x31   : > { %319 = vrot.lane.b32.xlu1 %v317_v3, %s941_s16  ;;  %352 = vst [vmem:[#allocation1] ss:$2 sm:$0xff] %v311_v2 }
  0x38   : > { %v353_v5 = vld.sshfl [vmem:[#allocation1] sm:$0xff pattern:$0x75316420]  ;;  %v354_v6 = vld.sshfl [vmem:[#allocation1 + $0x8] sm:$0xff pattern:$0x75316420] }
  0x39   : > { %321 = vrot.lane.b32.xlu1 %v318_v4, %s941_s16  ;;  %355 = vrot.lane.b32.xlu0 %v353_v5, %s942_s17  ;;  %388 = vst [vmem:[#allocation1] ss:$2 sm:$0xff] %v311_v2 }
  0x40   : > { %v389_v7 = vld.sshfl [vmem:[#allocation1] sm:$0xff pattern:$0x75316420]  ;;  %v390_v8 = vld.sshfl [vmem:[#allocation1 + $0x8] sm:$0xff pattern:$0x75316420] }
  0x41   : > { %357 = vrot.lane.b32.xlu1 %v354_v6, %s942_s17  ;;  %391 = vrot.lane.b32.xlu0 %v389_v7, %s943_s26  ;;  %426 = vst [vmem:[#allocation1] ss:$2 sm:$0xff] %v311_v2 }
  0x48   : > { %v427_v9 = vld.sshfl [vmem:[#allocation1] sm:$0xff pattern:$0x75316420]  ;;  %v428_v10 = vld.sshfl [vmem:[#allocation1 + $0x8] sm:$0xff pattern:$0x75316420] }
  0x49   : > { %393 = vrot.lane.b32.xlu0 %v390_v8, %s943_s26  ;;  %429 = vrot.lane.b32.xlu2 %v427_v9, %s942_s17  ;;  %486 = vst [vmem:[#allocation1] ss:$2 sm:$0xff] %v311_v2 }
  0x50   : > { %v487_v11 = vld.sshfl [vmem:[#allocation1] sm:$0xff pattern:$0x75316420]  ;;  %v488_v12 = vld.sshfl [vmem:[#allocation1 + $0x8] sm:$0xff pattern:$0x75316420] }
  0x51   : > { %522 = vst [vmem:[#allocation1] ss:$2 sm:$0xff] %v311_v2  ;;  %431 = vrot.lane.b32.xlu2 %v428_v10, %s942_s17 }
  0x58   : > { %v524_v13 = vld.sshfl [vmem:[#allocation1 + $0x8] sm:$0xff pattern:$0x75316420]  ;;  %v523_v14 = vld.sshfl [vmem:[#allocation1] sm:$0xff pattern:$0x75316420] }
  0x59   : > { %527 = vrot.lane.b32.xlu0 %v524_v13, %s943_s26  ;;  %558 = vst [vmem:[#allocation1] ss:$2 sm:$0xff] %v311_v2  ;;  %525 = vrot.lane.b32.xlu2 %v523_v14, %s943_s26  ;;  %s624_s26 = scalar_lea.hbm %s1175_s6, %s760_s14 }
  0x5a   : > { %s627_s7 = sshll.u32 %s624_s26, 4  ;;  %s628_s7 = int_to_ptr.hbm [resolvable:$true] %s627_s7 }
  0x5b   : > { %s859_s25 = sshra.s32 %s628_s7, 4  ;;  %s860_s25 = int_to_ptr.hbm [resolvable:$true] %s859_s25 }
  0x5c   : > { %s861_s8 = scalar_lea.hbm %s860_s25, 16  ;;  %p866_p5 = scmp.lt.s32.totalorder %s860_s25, %s1175_s6 }
  0x5d   : > { %p862_p1 = scmp.ne.s32.totalorder %s860_s25, %s861_s8  ;;  %p867_p6 = scmp.lt.s32.totalorder %s865_s20, %s861_s8 }
  0x5f   : > { %p863_p2 = pnand %p862_p1, %p1035_p3  ;;  %p868_p7 = por %p867_p6, %p866_p5 }
  0x60   : > { %v559_v15 = vld.sshfl [vmem:[#allocation1] sm:$0xff pattern:$0x75316420]  ;;  %v560_v16 = vld.sshfl [vmem:[#allocation1 + $0x8] sm:$0xff pattern:$0x75316420] }
  0x61   : > { %561 = vrot.lane.b32.xlu1 %v559_v15, %s944_s27  ;;  %489 = vrot.lane.b32.xlu0 %v487_v11, %s941_s16  ;;  %p864_p4 = pneg %p863_p2 }
  0x62   : > { %563 = vrot.lane.b32.xlu2 %v560_v16, %s944_s27  ;;  %s625_s27 = sshll.u32 %s289_s9, 4  ;;  %s626_s27 = int_to_ptr.vmem [resolvable:$true] %s625_s27 }
  0x63   : > { %p869_p9 = pnand %p868_p7, %p864_p4 }
  0x69   : > { %491 = vrot.lane.b32.xlu1 %v488_v12, %s941_s16  ;;  %604 = vperm.xlu0 %844, %v601_v34  }
  0x6a   : > { %596 = vperm.xlu2 %843, %v593_v35  }
  0xa3   : > { %v320_v17 = vpop.permute.xlu1 %319  ;;  %v430_v18 = vpop.permute.xlu2 %429 }
  0xab   : > { %v322_v19 = vpop.permute.xlu1 %321  ;;  %v356_v20 = vpop.permute.xlu0 %355 }
  0xac   : > { %v324_v21 = vsel %vm323_vm1, %v320_v17, %v322_v19  ;;  %v432_v22 = vpop.permute.xlu2 %431 }
  0xad   : > { %737 = vmatpush.msk.msra.mxu0 %vm329_vm2, %v324_v21  ;;  %v433_v23 = vsel %vm359_vm3, %v430_v18, %v432_v22 }
  0xae   : > { %745 = vmatpush.msk.msra.mxu3 %vm329_vm2, %v433_v23  ;;  %738 = vmatmul.msk.f32.vlgmr.msra.gmra.mxu0 %vm325_vm4, %v736_v24 }
  0xaf   : > { %747 = vmatpush.msk.msrb.mxu0 %vm329_vm2, %v311_v2  ;;  %746 = vmatmul.msk.f32.vlgmr.msra.gmra.mxu3 %vm325_vm4, %v744_v27 }
  0xb3   : > { %v358_v25 = vpop.permute.xlu1 %357  ;;  %v392_v26 = vpop.permute.xlu0 %391 }
  0xb4   : > { %v360_v29 = vsel %vm359_vm3, %v356_v20, %v358_v25  ;;  %v526_v37 = vpop.permute.xlu2 %525 }
  0xb5   : > { %739 = vmatpush.msk.msra.mxu1 %vm329_vm2, %v360_v29 }
  0xb6   : > { %740 = vmatmul.msk.f32.vlgmr.msra.gmra.mxu1 %vm325_vm4, %v312_v28  ;;  %748 = vmatmul.msk.f32.vlgmr.msrb.gmra.mxu0 %vm325_vm4, %v423_v30 }
  0xbb   : > { %v394_v31 = vpop.permute.xlu0 %393 }
  0xbc   : > { %v396_v33 = vsel %vm395_vm5, %v392_v26, %v394_v31  ;;  %v564_v41 = vpop.permute.xlu2 %563 }
  0xbd   : > { %742 = vmatpush.msk.msra.mxu2 %vm329_vm2, %v396_v33 }
  0xbe   : > { %743 = vmatmul.msk.f32.vlgmr.msra.gmra.mxu2 %vm325_vm4, %v741_v32 }
  0xc4   : > { %v597_v53 = vpop.permute.xlu2 %596 }
  0xcb   : > { %v528_v38 = vpop.permute.xlu0 %527 }
  0xcc   : > { %v529_v40 = vsel %vm395_vm5, %v526_v37, %v528_v38 }
  0xcd   : > { %753 = vmatpush.msk.msrb.mxu2 %vm329_vm2, %v529_v40 }
  0xce   : > { %754 = vmatmul.msk.f32.vlgmr.msrb.gmra.mxu2 %vm325_vm4, %v752_v39 }
  0xd3   : > { %v562_v42 = vpop.permute.xlu1 %561  ;;  %v490_v45 = vpop.permute.xlu0 %489 }
  0xd4   : > { %v566_v44 = vsel %vm565_vm6, %v562_v42, %v564_v41 }
  0xd5   : > { %756 = vmatpush.msk.msrb.mxu3 %vm329_vm2, %v566_v44 }
  0xd6   : > { %757 = vmatmul.msk.f32.vlgmr.msrb.gmra.mxu3 %vm325_vm4, %v755_v43 }
  0xdb   : > { %v492_v46 = vpop.permute.xlu1 %491  ;;  %v605_v1 = vpop.permute.xlu0 %604 }
  0xdc   : > { %v493_v48 = vsel %vm323_vm1, %v490_v45, %v492_v46 }
  0xdd   : > { %750 = vmatpush.msk.msrb.mxu1 %vm329_vm2, %v493_v48 }
  0xde   : > { %751 = vmatmul.msk.f32.vlgmr.msrb.gmra.mxu1 %vm325_vm4, %v749_v47 }
 0x12b   : > { %v349_v50 = vpop.f32.mrf.mxu0 }
 0x132   : > { %v456_v57 = vpop.f32.mrf.mxu3 }
 0x133   : > { %v383_v49 = vpop.f32.mrf.mxu1  ;;  %v481_v58 = vpop.f32.mrf.mxu0 }
 0x134   : > { %v384_v51 = vadd.f32 %v383_v49, %v349_v50  ;;  %v482_v59 = vadd.f32 %v481_v58, %v456_v57 }
 0x141   : > { %v419_v52 = vpop.f32.mrf.mxu2 }
 0x142   : > { %v422_v54 = vadd.f32 %v419_v52, %v384_v51 }
 0x144   : > { %v599_v55 = vadd.f32 %v597_v53, %v422_v54 }
 0x146   : > { %v600_v56 = vmax.f32 %v599_v55, 0.0 }
 0x148   : > { %609 = vst [vmem:[%s289_s9] sm:$0xff] %v600_v56 }
 0x151   : > { %v552_v61 = vpop.f32.mrf.mxu2 }
 0x159   : > { %v589_v63 = vpop.f32.mrf.mxu3 }
 0x15b   : > { %v516_v60 = vpop.f32.mrf.mxu1 }
 0x15c   : > { %v519_v62 = vadd.f32 %v516_v60, %v482_v59 }
 0x15e   : > { %v555_v0 = vadd.f32 %v552_v61, %v519_v62 }
 0x160   : > { %v592_v2 = vadd.f32 %v589_v63, %v555_v0 }
 0x162   : > { %v607_v3 = vadd.f32 %v605_v1, %v592_v2 }
 0x164   : > { %v608_v4 = vmax.f32 %v607_v3, 0.0 }
 0x166   : > { %610 = vst [vmem:[%s289_s9 + $0x8] sm:$0xff] %v608_v4 }
 0x167   : > { %872 = shalt.err (!%p869_p9)
}
 0x168   : > { %s946_s29 = smov 128   ;;  %s947_s9 = smov 256  }
 0x169   : > { %s948_s13 = smov 8  }
 0x16a   : > { %764 = dma.vmem_to_hbm [thread:$0]  (%p1035_p3), %s626_s27, 256, %s628_s7, %s612_s24, %s946_s29, %s947_s9, %s948_s13  }
 0x16b PF: > { %p770_p10 = scmp.ge.s32.totalorder %s939_s28, 2  ;;  %s642_s14 = sand.u32 1, %s911_s21  }
 0x16c   : > { %s643_s16 = scalar_lea.sflag [#allocation4], %s642_s14 }
 0x16d   : > { %p767_p11 = pnand %p770_p10, %p1044_p8 }
 0x16f   : > { %p768_p12 = pneg %p767_p11 }
 0x171   : > { %906 = dma.done.wait (%p768_p12), %s643_s16, 256  }
 0x172   : > { %908 = vsyncadd (%p768_p12), %s643_s16, 4294967040  ;;  %s19_s28 = sadd.s32 1, %s939_s28   ;;  %s1186_s24 = sld [smem:[#allocation6_spill]] }
 0x173   : > { %p16_p13 = scmp.ge.s32.totalorder %s19_s28, 6   ;;  %s1187_s25 = sld [smem:[#allocation7_spill]] }
 0x174   : > { %s1188_s26 = sld [smem:[#allocation8_spill]]  ;;  %s1190_s21 = smov %s915_s22 }
 0x175   : > { %s1189_s27 = sld [smem:[#allocation9_spill]]  ;;  %s1191_s22 = smov %s919_s23 }
 0x176   : > { %s1192_s23 = smov %s1053_s15  ;;  %18 = sbr.rel (!%p16_p13) target bundleno = 5 (0x5), region = 88 }
 0x17b   :  { %649 = vsyncpa [#allocation4], 1 }
 0x17c   :  { %651 = vsyncpa [#allocation4 + $0x1], 1 }

</bundles_post_ra>
